<compile_context>
chip_gen: v6e
topology: v6e:2x2x1
jax: 0.10.0
libtpu: 0.0.40
codegen_flags: <defaults>
</compile_context>

<pallas_src>
import functools

import jax
import jax.numpy as jnp
from jax.experimental import pallas as pl
from jax.experimental.pallas import tpu as pltpu


def _sdpa_kernel(q_ref, k_ref, v_ref, out_ref, sfm_ref, *maybe_attn_ref,
                 inv_temperature, mxu_dtype):
    # Blocks: q (BB, TQ, Dk), k (BB, Lk, Dk), v (BB, Lk, Dv).
    # Fold 1/temperature into Q: scales TQ*Dk elements instead of TQ*Lk and
    # uses a multiply instead of a divide.
    q = q_ref[...] * inv_temperature
    k = k_ref[...]
    v = v_ref[...]

    # q . k^T with the transpose folded into the contraction dims (no
    # materialized k.T / XLU transpose), f32 accumulation on the MXU.
    attn = jnp.einsum(
        "bqd,bkd->bqk",
        q.astype(mxu_dtype),
        k.astype(mxu_dtype),
        preferred_element_type=jnp.float32,
    )
    if maybe_attn_ref:  # static (trace-time) condition: logits store is optional
        maybe_attn_ref[0][...] = attn.astype(maybe_attn_ref[0].dtype)

    # Numerically stable softmax over the last dim (PyTorch Softmax(dim=2)).
    m = jnp.max(attn, axis=-1, keepdims=True)
    e = jnp.exp(attn - m)
    denom = jnp.sum(e, axis=-1, keepdims=True)
    sfm = e / denom  # exact divide; denom is only (BB, TQ, 1) elements
    sfm_ref[...] = sfm.astype(sfm_ref.dtype)

    # P @ V, f32 accumulation on the MXU.
    out = jnp.einsum(
        "bqk,bkd->bqd",
        sfm.astype(mxu_dtype),
        v.astype(mxu_dtype),
        preferred_element_type=jnp.float32,
    )
    out_ref[...] = out.astype(out_ref.dtype)


def _vmem_capacity_bytes():
    # Per-generation VMEM (128 MiB on v5e/v6e, 64 MiB per TensorCore on v7x).
    try:
        return int(pltpu.get_tpu_info().vmem_capacity_bytes)
    except Exception:  # not on a TPU / interpret mode: assume the smallest (v7x)
        return 64 * 1024 * 1024


def _vmem_estimate(bb, tq, lk, dk, dv, in_bytes, out_bytes, n_attn_outs):
    # Double-buffered pipeline I/O + f32 compute temporaries for the (TQ, Lk) tile.
    io = 2 * bb * (
        tq * dk * in_bytes                      # q block
        + lk * (dk + dv) * in_bytes             # resident k, v blocks
        + tq * dv * out_bytes                   # output block
        + n_attn_outs * tq * lk * out_bytes     # sfm (+ attn) blocks
    )
    scratch = 4 * bb * tq * lk * 4              # attn / e / sfm f32 temporaries (slack)
    return io + scratch


def _pick_tiles(B, Lq, Lk, Dk, Dv, in_bytes, out_bytes, n_attn_outs, budget, align):
    est = lambda bb, tq: _vmem_estimate(
        bb, tq, Lk, Dk, Dv, in_bytes, out_bytes, n_attn_outs)

    # q-tile: largest sublane-aligned divisor of Lq (up to 1024) fitting the budget.
    cands = [c for c in (1024, 512, 256, 128, 64, 32, 16, 8)
             if c <= Lq and Lq % c == 0 and c % align == 0]
    if not cands:
        block_q = Lq  # full-extent block is always layout-legal
    else:
        block_q = cands[-1]
        for c in cands:
            if est(1, c) <= budget:
                block_q = c
                break

    # Fold batch elements into one grid step only after the q-tile is as large
    # as the budget allows (a bigger q-tile feeds the MXU better than batching).
    block_b = 1
    for c in (8, 4, 2):
        if B % c == 0 and est(c, block_q) <= budget:
            block_b = c
            break

    # Megacore guard (v7x has 2 TensorCores): keep >=2 grid steps on the
    # parallel axes when the shape allows it, so one core isn't left idle.
    if (B // block_b) * (Lq // block_q) < 2:
        half = block_q // 2
        if half >= align and half % align == 0 and Lq % half == 0:
            block_q = half

    return block_b, block_q


def scaled_dot_product_attention(q, k, v, temperature, *,
                                 return_attn=True, use_bf16_matmul=False):
    """q: (B, Lq, Dk), k: (B, Lk, Dk), v: (B, Lk, Dv).

    Returns (out, sfm_attn, attn) like the PyTorch module, or (out, sfm_attn)
    when return_attn=False (roughly halves HBM store traffic for large Lk).
    use_bf16_matmul=True runs the MXU matmuls with bf16 operands (f32 accum)
    for f32 inputs -- opt-in, numerics-affecting.
    """
    B, Lq, Dk = q.shape
    Bk, Lk, Dk2 = k.shape
    Bv, Lkv, Dv = v.shape
    assert (Bk, Dk2) == (B, Dk) and (Bv, Lkv) == (B, Lk)

    out_dtype = q.dtype  # attention matrices in the input dtype; f32 internally
    in_bytes = jnp.dtype(q.dtype).itemsize
    out_bytes = jnp.dtype(out_dtype).itemsize
    mxu_dtype = (jnp.bfloat16
                 if (use_bf16_matmul and q.dtype == jnp.float32) else q.dtype)

    # Per-generation VMEM budget: 60% of capacity for the tile picker,
    # 75% as the explicit Mosaic scoped-VMEM limit.
    cap = _vmem_capacity_bytes()
    budget = int(0.60 * cap)
    vmem_limit = int(0.75 * cap)

    # Pad Lq to a sublane-aligned multiple so a proper q-tile is always legal
    # (instead of a full-extent fallback block that can blow VMEM for long Lq).
    align = {4: 8, 2: 16, 1: 32}.get(in_bytes, 8)
    Lqp = ((Lq + align - 1) // align) * align
    q_in = q if Lqp == Lq else jnp.pad(q, ((0, 0), (0, Lqp - Lq), (0, 0)))

    n_attn_outs = 2 if return_attn else 1
    block_b, block_q = _pick_tiles(B, Lqp, Lk, Dk, Dv, in_bytes, out_bytes,
                                   n_attn_outs, budget, align)

    kernel = functools.partial(
        _sdpa_kernel,
        inv_temperature=1.0 / float(temperature),
        mxu_dtype=mxu_dtype,
    )

    grid = (B // block_b, Lqp // block_q)

    out_shapes = [
        jax.ShapeDtypeStruct((B, Lqp, Dv), out_dtype),
        jax.ShapeDtypeStruct((B, Lqp, Lk), out_dtype),
    ]
    out_specs = [
        pl.BlockSpec((block_b, block_q, Dv), lambda b, i: (b, i, 0)),
        pl.BlockSpec((block_b, block_q, Lk), lambda b, i: (b, i, 0)),
    ]
    if return_attn:
        out_shapes.append(jax.ShapeDtypeStruct((B, Lqp, Lk), out_dtype))
        out_specs.append(pl.BlockSpec((block_b, block_q, Lk),
                                      lambda b, i: (b, i, 0)))

    grid_spec = pltpu.PrefetchScalarGridSpec(
        num_scalar_prefetch=0,
        grid=grid,
        in_specs=[
            pl.BlockSpec((block_b, block_q, Dk), lambda b, i: (b, i, 0)),
            # K/V return the same block for every q-tile index i -> they stay
            # resident in VMEM across the inner axis (no re-DMA).
            pl.BlockSpec((block_b, Lk, Dk), lambda b, i: (b, 0, 0)),
            pl.BlockSpec((block_b, Lk, Dv), lambda b, i: (b, 0, 0)),
        ],
        out_specs=out_specs,
    )

    results = pl.pallas_call(
        kernel,
        out_shape=tuple(out_shapes),
        grid_spec=grid_spec,
        compiler_params=pltpu.CompilerParams(
            # Both axes are fully independent; lets Mosaic shard steps across
            # the two TensorCores on v7x (no-op on v5e/v6e).
            dimension_semantics=("parallel", "parallel"),
            vmem_limit_bytes=vmem_limit,
        ),
    )(q_in, k, v)

    if Lqp != Lq:
        results = tuple(r[:, :Lq] for r in results)

    if return_attn:
        out, sfm_attn, attn = results
        return out, sfm_attn, attn
    out, sfm_attn = results
    return out, sfm_attn


if __name__ == "__main__":
    key = jax.random.PRNGKey(0)
    kq, kk, kv = jax.random.split(key, 3)

    B, Lq, Lk, Dk, Dv = 2, 8, 8, 32, 32
    temperature = float(Dk) ** 0.5  # standard: sqrt(d_k)

    q = jax.random.normal(kq, (B, Lq, Dk), dtype=jnp.float32)
    k = jax.random.normal(kk, (B, Lk, Dk), dtype=jnp.float32)
    v = jax.random.normal(kv, (B, Lk, Dv), dtype=jnp.float32)

    out, sfm_attn, attn = scaled_dot_product_attention(q, k, v, temperature)
    jax.block_until_ready((out, sfm_attn, attn))

    # Pure-JAX reference (full-precision matmuls so the check isolates the kernel).
    hp = jax.lax.Precision.HIGHEST
    attn_ref = jnp.einsum("bqd,bkd->bqk", q, k, precision=hp) / temperature
    sfm_ref = jax.nn.softmax(attn_ref, axis=2)
    out_ref = jnp.einsum("bqk,bkd->bqd", sfm_ref, v, precision=hp)

    assert jnp.allclose(attn, attn_ref, atol=1e-4, rtol=1e-4)
    assert jnp.allclose(sfm_attn, sfm_ref, atol=1e-4, rtol=1e-4)
    assert jnp.allclose(out, out_ref, atol=1e-4, rtol=1e-4)

    # Store-reduced path (pre-softmax logits output skipped) must agree too.
    out2, sfm2 = scaled_dot_product_attention(q, k, v, temperature,
                                              return_attn=False)
    jax.block_until_ready((out2, sfm2))
    assert jnp.allclose(out2, out_ref, atol=1e-4, rtol=1e-4)
    assert jnp.allclose(sfm2, sfm_ref, atol=1e-4, rtol=1e-4)

    print("KERNEL_OK")
</pallas_src>

<mosaic_0001>
module attributes {stable_mosaic.version = 11 : i64} {
  func.func @_sdpa_kernel(%arg0: i32, %arg1: i32, %arg2: memref<2x8x32xf32, #tpu.memory_space<vmem>>, %arg3: memref<2x8x32xf32, #tpu.memory_space<vmem>>, %arg4: memref<2x8x32xf32, #tpu.memory_space<vmem>>, %arg5: memref<2x8x32xf32, #tpu.memory_space<vmem>>, %arg6: memref<2x8x8xf32, #tpu.memory_space<vmem>>, %arg7: memref<2x8x8xf32, #tpu.memory_space<vmem>>) attributes {dimension_semantics = [#tpu.dimension_semantics<parallel>, #tpu.dimension_semantics<parallel>], iteration_bounds = array<i64: 1, 1>, scalar_prefetch = 0 : i64, scratch_operands = 0 : i64, tpu.core_type = #tpu.core_type<tc>, window_params = [{transform_indices = @transform_0, window_bounds = array<i64: 2, 8, 32>}, {transform_indices = @transform_1, window_bounds = array<i64: 2, 8, 32>}, {transform_indices = @transform_2, window_bounds = array<i64: 2, 8, 32>}, {transform_indices = @transform_3, window_bounds = array<i64: 2, 8, 32>}, {transform_indices = @transform_4, window_bounds = array<i64: 2, 8, 8>}, {transform_indices = @transform_5, window_bounds = array<i64: 2, 8, 8>}]} {
    %c0 = arith.constant 0 : index
    %c0_0 = arith.constant 0 : index
    %c0_1 = arith.constant 0 : index
    %0 = vector.load %arg2[%c0, %c0_0, %c0_1] : memref<2x8x32xf32, #tpu.memory_space<vmem>>, vector<2x8x32xf32>
    %cst = arith.constant 0.176776692 : f32
    %1 = vector.broadcast %cst : f32 to vector<2x8x32xf32>
    %2 = arith.mulf %0, %1 : vector<2x8x32xf32>
    %c0_2 = arith.constant 0 : index
    %c0_3 = arith.constant 0 : index
    %c0_4 = arith.constant 0 : index
    %3 = vector.load %arg3[%c0_2, %c0_3, %c0_4] : memref<2x8x32xf32, #tpu.memory_space<vmem>>, vector<2x8x32xf32>
    %c0_5 = arith.constant 0 : index
    %c0_6 = arith.constant 0 : index
    %c0_7 = arith.constant 0 : index
    %4 = vector.load %arg4[%c0_5, %c0_6, %c0_7] : memref<2x8x32xf32, #tpu.memory_space<vmem>>, vector<2x8x32xf32>
    "tpu.trace_start"() <{level = 10 : i32, message = "bqd,bkd->bqk"}> : () -> ()
    %cst_8 = arith.constant dense<0.000000e+00> : vector<2x8x8xf32>
    %5 = tpu.matmul %2, %3, %cst_8 {dimension_numbers = #tpu.dot_dimension_numbers<[2], [2], [1], [1], [0, 0, 0, 1, 1, 1], [0], [0]>} : vector<2x8x32xf32>, vector<2x8x32xf32>, vector<2x8x8xf32> -> vector<2x8x8xf32>
    "tpu.trace_stop"() : () -> ()
    %c0_9 = arith.constant 0 : index
    %c0_10 = arith.constant 0 : index
    %c0_11 = arith.constant 0 : index
    %6 = vector.load %arg7[%c0_9, %c0_10, %c0_11] : memref<2x8x8xf32, #tpu.memory_space<vmem>>, vector<2x8x8xf32>
    tpu.vector_store %arg7[%c0_9, %c0_10, %c0_11], %5 {strides = array<i32>} : memref<2x8x8xf32, #tpu.memory_space<vmem>>, vector<2x8x8xf32>,
    %cst_12 = arith.constant dense<0xFF800000> : vector<2x8xf32>
    %7 = vector.multi_reduction <maximumf>, %5, %cst_12 [2] : vector<2x8x8xf32> to vector<2x8xf32>
    %8 = vector.shape_cast %7 : vector<2x8xf32> to vector<2x8x1xf32>
    %9 = vector.broadcast %8 : vector<2x8x1xf32> to vector<2x8x8xf32>
    %10 = arith.subf %5, %9 : vector<2x8x8xf32>
    %11 = math.exp %10 : vector<2x8x8xf32>
    %cst_13 = arith.constant dense<0.000000e+00> : vector<2x8xf32>
    %12 = vector.multi_reduction <add>, %11, %cst_13 [2] : vector<2x8x8xf32> to vector<2x8xf32>
    %13 = vector.shape_cast %12 : vector<2x8xf32> to vector<2x8x1xf32>
    %14 = vector.broadcast %13 : vector<2x8x1xf32> to vector<2x8x8xf32>
    %15 = arith.divf %11, %14 : vector<2x8x8xf32>
    %c0_14 = arith.constant 0 : index
    %c0_15 = arith.constant 0 : index
    %c0_16 = arith.constant 0 : index
    %16 = vector.load %arg6[%c0_14, %c0_15, %c0_16] : memref<2x8x8xf32, #tpu.memory_space<vmem>>, vector<2x8x8xf32>
    tpu.vector_store %arg6[%c0_14, %c0_15, %c0_16], %15 {strides = array<i32>} : memref<2x8x8xf32, #tpu.memory_space<vmem>>, vector<2x8x8xf32>,
    "tpu.trace_start"() <{level = 10 : i32, message = "bqk,bkd->bqd"}> : () -> ()
    %cst_17 = arith.constant dense<0.000000e+00> : vector<2x8x32xf32>
    %17 = tpu.matmul %15, %4, %cst_17 {dimension_numbers = #tpu.dot_dimension_numbers<[2], [1], [1], [2], [0, 0, 0, 1, 1, 2], [0], [0]>} : vector<2x8x8xf32>, vector<2x8x32xf32>, vector<2x8x32xf32> -> vector<2x8x32xf32>
    "tpu.trace_stop"() : () -> ()
    %c0_18 = arith.constant 0 : index
    %c0_19 = arith.constant 0 : index
    %c0_20 = arith.constant 0 : index
    %18 = vector.load %arg5[%c0_18, %c0_19, %c0_20] : memref<2x8x32xf32, #tpu.memory_space<vmem>>, vector<2x8x32xf32>
    tpu.vector_store %arg5[%c0_18, %c0_19, %c0_20], %17 {strides = array<i32>} : memref<2x8x32xf32, #tpu.memory_space<vmem>>, vector<2x8x32xf32>,
    return
  }
  func.func @transform_0(%arg0: i32, %arg1: i32) -> (i32, i32, i32) {
    %c0_i32 = arith.constant 0 : i32
    %c0_i32_0 = arith.constant 0 : i32
    return %arg0, %arg1, %c0_i32 : i32, i32, i32
  }
  func.func @transform_1(%arg0: i32, %arg1: i32) -> (i32, i32, i32) {
    %c0_i32 = arith.constant 0 : i32
    %c0_i32_0 = arith.constant 0 : i32
    %c0_i32_1 = arith.constant 0 : i32
    return %arg0, %c0_i32, %c0_i32_0 : i32, i32, i32
  }
  func.func @transform_2(%arg0: i32, %arg1: i32) -> (i32, i32, i32) {
    %c0_i32 = arith.constant 0 : i32
    %c0_i32_0 = arith.constant 0 : i32
    %c0_i32_1 = arith.constant 0 : i32
    return %arg0, %c0_i32, %c0_i32_0 : i32, i32, i32
  }
  func.func @transform_3(%arg0: i32, %arg1: i32) -> (i32, i32, i32) {
    %c0_i32 = arith.constant 0 : i32
    %c0_i32_0 = arith.constant 0 : i32
    return %arg0, %arg1, %c0_i32 : i32, i32, i32
  }
  func.func @transform_4(%arg0: i32, %arg1: i32) -> (i32, i32, i32) {
    %c0_i32 = arith.constant 0 : i32
    %c0_i32_0 = arith.constant 0 : i32
    return %arg0, %arg1, %c0_i32 : i32, i32, i32
  }
  func.func @transform_5(%arg0: i32, %arg1: i32) -> (i32, i32, i32) {
    %c0_i32 = arith.constant 0 : i32
    %c0_i32_0 = arith.constant 0 : i32
    return %arg0, %arg1, %c0_i32 : i32, i32, i32
  }
}

</mosaic_0001>

<bundles_post_ra>
// kernel: tpu_custom_call.1
= control target key start
LH: loop header
LB: loop body
LE: loop exit
PB: predicated region body
PF: predicated region fallthrough
CT: control target
= control target key end

     0   :  { %11 = vsyncpa [#allocation3], 0  ;;  %s721_s0 = inlined_call_operand.hbm [shape: f32[2,8,32], index: 0, kind: input, shape index: {}]   ;;  %s722_s1 = inlined_call_operand.hbm [shape: f32[2,8,32], index: 1, kind: input, shape index: {}]   ;;  %s723_s2 = inlined_call_operand.hbm [shape: f32[2,8,32], index: 2, kind: input, shape index: {}]   ;;  %s724_s3 = inlined_call_operand.hbm [shape: f32[2,8,32], index: 3, kind: output, shape index: {0}]   ;;  %s725_s4 = inlined_call_operand.hbm [shape: f32[2,8,8], index: 4, kind: output, shape index: {1}]   ;;  %s726_s5 = inlined_call_operand.hbm [shape: f32[2,8,8], index: 5, kind: output, shape index: {2}]  }
   0x1   :  { %12 = vsyncpa [#allocation6], 0 }
   0x2   :  { %13 = vsyncpa [#allocation4], 0 }
   0x3   :  { %14 = vsyncpa [#allocation10], 0  ;;  %s625_s18 = smov [#allocation5]   ;;  %s626_s20 = smov [#allocation2]  }
   0x4   :  { %s32_s19 = sshll.u32 %s625_s18, 4  ;;  %s20_s21 = sshll.u32 %s626_s20, 4  ;;  %s33_s19 = int_to_ptr.vmem [resolvable:$true] %s32_s19  ;;  %s21_s21 = int_to_ptr.vmem [resolvable:$true] %s20_s21 }
   0x5   :  { %s505_s22 = scalar_lea.vmem %s33_s19, 256  ;;  %p510_p1 = scmp.lt.s32.totalorder %s33_s19, %s33_s19 }
   0x6   :  { %p506_p0 = scmp.ne.s32.totalorder %s33_s19, %s505_s22  ;;  %p511_p2 = scmp.lt.s32.totalorder %s505_s22, %s505_s22 }
   0x8   :  { %p512_p3 = por %p511_p2, %p510_p1 }
   0xa   :  { %p513_p4 = pnand %p512_p3, %p506_p0 }
   0xc   :  { %516 = shalt.err (!%p513_p4)
}
   0xd   :  { %s627_s23 = smov 128   ;;  %s628_s24 = smov 8  }
   0xe   :  { %38 = dma.hbm_to_vmem [thread:$0]  %s722_s1, 256, %s33_s19, [#allocation6], %s627_s23, %s627_s23, %s628_s24  }
   0xf   :  { %s525_s27 = scalar_lea.vmem %s21_s21, 256  ;;  %p530_p6 = scmp.lt.s32.totalorder %s21_s21, %s21_s21 }
  0x10   :  { %p526_p5 = scmp.ne.s32.totalorder %s21_s21, %s525_s27  ;;  %p531_p7 = scmp.lt.s32.totalorder %s525_s27, %s525_s27 }
  0x12   :  { %p532_p8 = por %p531_p7, %p530_p6 }
  0x14   :  { %p533_p9 = pnand %p532_p8, %p526_p5 }
  0x16   :  { %536 = shalt.err (!%p533_p9)
}
  0x17   :  { %26 = dma.hbm_to_vmem [thread:$0]  %s721_s0, 256, %s21_s21, [#allocation3], %s627_s23, %s627_s23, %s628_s24  }
  0x18   :  { %s629_s30 = smov [#allocation7]  }
  0x19   :  { %s44_s6 = sshll.u32 %s629_s30, 4  ;;  %s45_s6 = int_to_ptr.vmem [resolvable:$true] %s44_s6 }
  0x1a   :  { %s545_s7 = scalar_lea.vmem %s45_s6, 256  ;;  %p550_p11 = scmp.lt.s32.totalorder %s45_s6, %s45_s6 }
  0x1b   :  { %p546_p10 = scmp.ne.s32.totalorder %s45_s6, %s545_s7  ;;  %p551_p12 = scmp.lt.s32.totalorder %s545_s7, %s545_s7 }
  0x1d   :  { %p552_p13 = por %p551_p12, %p550_p11 }
  0x1f   :  { %p553_p0 = pnand %p552_p13, %p546_p10 }
  0x21   :  { %556 = shalt.err (!%p553_p0)
}
  0x22   :  { %50 = dma.hbm_to_vmem [thread:$0]  %s723_s2, 256, %s45_s6, [#allocation6], %s627_s23, %s627_s23, %s628_s24  }
  0x23   :  { %617 = dma.done.wait [#allocation3], 256  }
  0x24   :  { %618 = vsyncadd [#allocation3], 4294967040 }
  0x25   :  { %619 = dma.done.wait [#allocation6], 512  }
  0x26   :  { %620 = vsyncadd [#allocation6], 4294966784  ;;  %v630_v0 = vmov 0.0   ;;  %vm631_vm0 = vmmov 0   ;;  %vm68_vm1 = vcmask 261120   ;;  %v64_v1 = vld [vmem:[#allocation5] sm:$0xff] }
  0x27   :  { %459 = vmatprep.subr.mxu0 %v630_v0  ;;  %464 = vmatprep.subr.mxu1 %v630_v0  ;;  %v65_v2 = vld [vmem:[#allocation5 + $0x8] sm:$0xff]  ;;  %v60_v3 = vld [vmem:[#allocation2] sm:$0xff]  ;;  %v61_v5 = vld [vmem:[#allocation2 + $0x8] sm:$0xff]  ;;  %vm221_vm2 = vcmask 64512   ;;  %s632_s0 = smov [#allocation9]  }
  0x28   :  { %461 = vmatprep.mubr.msk.f32.mxu0 %vm631_vm0, %v630_v0  ;;  %466 = vmatprep.mubr.msk.f32.mxu1 %vm631_vm0, %v630_v0  ;;  %v62_v4 = vmul.f32 0.17677669, %v60_v3  ;;  %v63_v6 = vmul.f32 0.17677669, %v61_v5  ;;  %v66_v23 = vld [vmem:[#allocation7] sm:$0xff]  ;;  %v67_v24 = vld [vmem:[#allocation7 + $0x8] sm:$0xff] }
  0x29   :  { %460 = vmatpush3.xpose.msk.msra.mxu0 %vm68_vm1, %v64_v1  ;;  %465 = vmatpush3.xpose.msk.msra.mxu1 %vm68_vm1, %v65_v2  ;;  %s413_s2 = sshll.u32 %s632_s0, 4  ;;  %s414_s2 = int_to_ptr.vmem [resolvable:$true] %s413_s2 }
  0x2a   :  { %469 = vmatprep.subr.mxu0 %v630_v0  ;;  %474 = vmatprep.subr.mxu1 %v630_v0  ;;  %s557_s9 = scalar_lea.vmem %s414_s2, 256  ;;  %p562_p2 = scmp.lt.s32.totalorder %s414_s2, %s414_s2 }
  0x2b   :  { %p558_p1 = scmp.ne.s32.totalorder %s414_s2, %s557_s9  ;;  %p563_p3 = scmp.lt.s32.totalorder %s557_s9, %s557_s9 }
  0x2c   :  { %462 = vmatmul.mubr.msk.f32.vlgmr.msra.gmra.mxu0 %vm68_vm1, %v62_v4  ;;  %467 = vmatmul.mubr.msk.f32.vlgmr.msra.gmra.mxu1 %vm68_vm1, %v63_v6 }
  0x2d   :  { %471 = vmatprep.mubr.msk.f32.mxu0 %vm631_vm0, %v630_v0  ;;  %476 = vmatprep.mubr.msk.f32.mxu1 %vm631_vm0, %v630_v0  ;;  %p564_p4 = por %p563_p3, %p562_p2 }
  0x2e   :  { %470 = vmatpush3.msra.mxu0 %v66_v23  ;;  %475 = vmatpush3.msra.mxu1 %v67_v24 }
  0x2f   :  { %p565_p5 = pnand %p564_p4, %p558_p1 }
  0xec   :  { %v141_v7 = vpop.f32.mrf.mxu0  ;;  %v217_v8 = vpop.f32.mrf.mxu1 }
  0xed   :  { %222 = vst.msk [vmem:[#allocation11] sm:$0xff] %vm221_vm2, %v141_v7  ;;  %223 = vst.msk [vmem:[#allocation11 + $0x8] sm:$0xff] %vm221_vm2, %v217_v8  ;;  %v224_v9 = vsel %vm221_vm2, %v141_v7, -inf  ;;  %v227_v12 = vsel %vm221_vm2, %v217_v8, -inf }
  0xee   :  { %225 = vmax.xlane.f32.xlu0 %v224_v9  ;;  %v463_v10 = vpop.f32.mrf.mxu0  ;;  %v468_v11 = vpop.f32.mrf.mxu1 }
  0xf2   :  { %228 = vmax.xlane.f32.xlu0 %v227_v12 }
 0x177   :  { %v226_v13 = vpop.xlane.xlu0 %225 }
 0x178   :  { %v230_v14 = vsub.f32 %v141_v7, %v226_v13 }
 0x17a   :  { %v232_v15 = vmul.f32 1.442695, %v230_v14 }
 0x17b   :  { %v229_v16 = vpop.xlane.xlu0 %228 }
 0x17c   :  { %489 = vpow2.f32 %v232_v15  ;;  %v231_v17 = vsub.f32 %v217_v8, %v229_v16 }
 0x17e   :  { %v234_v18 = vmul.f32 1.442695, %v231_v17 }
 0x180   :  { %491 = vpow2.f32 %v234_v18 }
 0x189   :  { %v490_v19 = vpop.eup %489 }
 0x18a   :  { %v236_v20 = vsel %vm221_vm2, %v490_v19, 0.0 }
 0x18b   :  { %237 = vadd.xlane.f32.xlu1 %v236_v20 }
 0x18d   :  { %v492_v21 = vpop.eup %491 }
 0x18e   :  { %v239_v22 = vsel %vm221_vm2, %v492_v21, 0.0 }
 0x18f   :  { %240 = vadd.xlane.f32.xlu1 %v239_v22 }
 0x214   :  { %v238_v25 = vpop.xlane.xlu1 %237 }
 0x215   :  { %493 = vrcp.f32 %v238_v25 }
 0x218   :  { %v241_v26 = vpop.xlane.xlu1 %240 }
 0x219   :  { %495 = vrcp.f32 %v241_v26 }
 0x222   :  { %v494_v27 = vpop.eup %493 }
 0x223   :  { %v243_v28 = vmul.f32 %v494_v27, %v490_v19 }
 0x225   :  { %472 = vmatmul.mubr.msk.f32.vlgmr.msra.gmra.mxu0 %vm221_vm2, %v243_v28  ;;  %246 = vst.msk [vmem:[#allocation9] sm:$0xff] %vm221_vm2, %v243_v28 }
 0x226   :  { %v496_v29 = vpop.eup %495 }
 0x227   :  { %v245_v30 = vmul.f32 %v496_v29, %v492_v21 }
 0x229   :  { %477 = vmatmul.mubr.msk.f32.vlgmr.msra.gmra.mxu1 %vm221_vm2, %v245_v30  ;;  %247 = vst.msk [vmem:[#allocation9 + $0x8] sm:$0xff] %vm221_vm2, %v245_v30 }
 0x22a   :  { %568 = shalt.err (!%p565_p5)
}
 0x22b   :  { %419 = dma.vmem_to_hbm [thread:$0]  %s414_s2, 256, %s725_s4, [#allocation10], %s627_s23, %s627_s23, %s628_s24  }
 0x22c   :  { %s633_s12 = smov [#allocation11]  }
 0x22d   :  { %s425_s13 = sshll.u32 %s633_s12, 4  ;;  %s426_s13 = int_to_ptr.vmem [resolvable:$true] %s425_s13 }
 0x22e   :  { %s577_s14 = scalar_lea.vmem %s426_s13, 256  ;;  %p582_p7 = scmp.lt.s32.totalorder %s426_s13, %s426_s13 }
 0x22f   :  { %p578_p6 = scmp.ne.s32.totalorder %s426_s13, %s577_s14  ;;  %p583_p8 = scmp.lt.s32.totalorder %s577_s14, %s577_s14 }
 0x231   :  { %p584_p9 = por %p583_p8, %p582_p7 }
 0x233   :  { %p585_p10 = pnand %p584_p9, %p578_p6 }
 0x235   :  { %588 = shalt.err (!%p585_p10)
}
 0x236   :  { %431 = dma.vmem_to_hbm [thread:$0]  %s426_s13, 256, %s726_s5, [#allocation10], %s627_s23, %s627_s23, %s628_s24  }
 0x237   :  { %s634_s17 = smov [#allocation8]  }
 0x238   :  { %s401_s4 = sshll.u32 %s634_s17, 4  ;;  %s402_s4 = int_to_ptr.vmem [resolvable:$true] %s401_s4 }
 0x239   :  { %s597_s18 = scalar_lea.vmem %s402_s4, 256  ;;  %p602_p12 = scmp.lt.s32.totalorder %s402_s4, %s402_s4 }
 0x23a   :  { %p598_p11 = scmp.ne.s32.totalorder %s402_s4, %s597_s18  ;;  %p603_p13 = scmp.lt.s32.totalorder %s597_s18, %s597_s18 }
 0x23c   :  { %p604_p0 = por %p603_p13, %p602_p12 }
 0x23e   :  { %p605_p1 = pnand %p604_p0, %p598_p11 }
 0x2e5   :  { %v317_v31 = vpop.f32.mrf.mxu0 }
 0x2e6   :  { %394 = vst.msk [vmem:[#allocation8] sm:$0xff] %vm68_vm1, %v317_v31 }
 0x2e7   :  { %v473_v32 = vpop.f32.mrf.mxu0 }
 0x2e9   :  { %v390_v33 = vpop.f32.mrf.mxu1 }
 0x2ea   :  { %395 = vst.msk [vmem:[#allocation8 + $0x8] sm:$0xff] %vm68_vm1, %v390_v33 }
 0x2eb   :  { %v478_v34 = vpop.f32.mrf.mxu1 }
 0x2ec   :  { %608 = shalt.err (!%p605_p1)
}
 0x2ed   :  { %407 = dma.vmem_to_hbm [thread:$0]  %s402_s4, 256, %s724_s3, [#allocation4], %s627_s23, %s627_s23, %s628_s24  }
 0x2ee   :  { %621 = dma.done.wait [#allocation4], 256  }
 0x2ef   :  { %622 = vsyncadd [#allocation4], 4294967040 }
 0x2f0   :  { %623 = dma.done.wait [#allocation10], 512  }
 0x2f1   :  { %624 = vsyncadd [#allocation10], 4294966784 }
 0x2f2   :  { %441 = vsyncpa [#allocation3], 1 }
 0x2f3   :  { %442 = vsyncpa [#allocation6], 1 }
 0x2f4   :  { %443 = vsyncpa [#allocation4], 1 }
 0x2f5   :  { %444 = vsyncpa [#allocation10], 1 }

</bundles_post_ra>
